<compile_context>
chip_gen: v6e
topology: v6e:2x2x1
jax: 0.10.0
libtpu: 0.0.40
codegen_flags: <defaults>
</compile_context>

<pallas_src>
import math
import jax
import jax.numpy as jnp
from jax.experimental import pallas as pl
from jax.experimental.pallas import tpu as pltpu


# ----------------------------------------------------------------------------
# Tiling helpers
# ----------------------------------------------------------------------------

def _pick_tile(dim, target):
    """Use the whole dim when it is small or not divisible by the target tile
    (demo shapes); otherwise tile with `target` (MXU/lane aligned on real shapes)."""
    if dim <= target or dim % target != 0:
        return dim
    return target


_VMEM_LIMIT = 32 * 1024 * 1024  # conservative: fits v5e/v6e/v7x scoped budgets


# ----------------------------------------------------------------------------
# Pallas kernels
# ----------------------------------------------------------------------------

def pallas_linear(x, w, b, act=None,
                  residual=None, ln_gamma=None, ln_beta=None, ln_eps=1e-12):
    """y = epilogue(x @ w + b).

    x: [M, K], w: [K, N], b: [N].
    Epilogues (fused into the final K step):
      * act in {None, "relu", "gelu", "tanh"}
      * if ln_gamma is given: y = LayerNorm(y + residual) * gamma + beta
        (N is not tiled in that case so the full row is available for the stats).
    Matmul operands are cast to bf16 in-kernel; accumulation is f32.
    """
    M, K = x.shape
    N = w.shape[1]
    fuse_ln = ln_gamma is not None

    tm = _pick_tile(M, 256)
    tk = _pick_tile(K, 512)
    tn = N if fuse_ln else _pick_tile(N, 256)
    gm, gn, gk = M // tm, N // tn, K // tk

    def kernel(x_ref, w_ref, b_ref, *rest):
        if fuse_ln:
            res_ref, g_ref, be_ref, o_ref, acc_ref = rest
        else:
            o_ref, acc_ref = rest
        k = pl.program_id(2)

        @pl.when(k == 0)
        def _():
            acc_ref[...] = jnp.zeros_like(acc_ref)

        acc_ref[...] += jnp.dot(
            x_ref[...].astype(jnp.bfloat16),
            w_ref[...].astype(jnp.bfloat16),
            preferred_element_type=jnp.float32)

        @pl.when(k == gk - 1)
        def _():
            y = acc_ref[...] + b_ref[...]
            if act == "relu":
                y = jnp.maximum(y, 0.0)
            elif act == "gelu":  # exact erf-based BERT gelu
                y = 0.5 * y * (1.0 + jax.lax.erf(y * 0.7071067811865476))
            elif act == "tanh":
                y = jnp.tanh(y)
            if fuse_ln:
                y = y + res_ref[...]
                mu = jnp.mean(y, axis=-1, keepdims=True)
                yc = y - mu
                var = jnp.mean(yc * yc, axis=-1, keepdims=True)
                y = yc * jax.lax.rsqrt(var + ln_eps) * g_ref[...] + be_ref[...]
            o_ref[...] = y.astype(o_ref.dtype)

    in_specs = [
        pl.BlockSpec((tm, tk), lambda i, j, kk: (i, kk)),
        pl.BlockSpec((tk, tn), lambda i, j, kk: (kk, j)),
        pl.BlockSpec((1, tn), lambda i, j, kk: (0, j)),
    ]
    inputs = [x, w, b.reshape(1, N)]
    if fuse_ln:
        in_specs += [
            pl.BlockSpec((tm, tn), lambda i, j, kk: (i, j)),
            pl.BlockSpec((1, tn), lambda i, j, kk: (0, j)),
            pl.BlockSpec((1, tn), lambda i, j, kk: (0, j)),
        ]
        inputs += [residual, ln_gamma.reshape(1, N), ln_beta.reshape(1, N)]

    return pl.pallas_call(
        kernel,
        out_shape=jax.ShapeDtypeStruct((M, N), jnp.float32),
        grid=(gm, gn, gk),
        in_specs=in_specs,
        out_specs=pl.BlockSpec((tm, tn), lambda i, j, kk: (i, j)),
        scratch_shapes=[pltpu.VMEM((tm, tn), jnp.float32)],
        compiler_params=pltpu.CompilerParams(
            dimension_semantics=("parallel", "parallel", "arbitrary"),
            vmem_limit_bytes=_VMEM_LIMIT),
    )(*inputs)


def pallas_layernorm(x, gamma, beta, eps=1e-12):
    """Row-wise layernorm over the last dim.  x: [M, H].  (Used only for embeddings;
    the per-layer layernorms are fused into pallas_linear.)"""
    M, H = x.shape
    tm = _pick_tile(M, 256)

    def kernel(x_ref, g_ref, b_ref, o_ref):
        xx = x_ref[...]
        mu = jnp.mean(xx, axis=-1, keepdims=True)
        xc = xx - mu
        var = jnp.mean(xc * xc, axis=-1, keepdims=True)
        o_ref[...] = xc * jax.lax.rsqrt(var + eps) * g_ref[...] + b_ref[...]

    return pl.pallas_call(
        kernel,
        out_shape=jax.ShapeDtypeStruct((M, H), jnp.float32),
        grid=(M // tm,),
        in_specs=[
            pl.BlockSpec((tm, H), lambda i: (i, 0)),
            pl.BlockSpec((1, H), lambda i: (0, 0)),
            pl.BlockSpec((1, H), lambda i: (0, 0)),
        ],
        out_specs=pl.BlockSpec((tm, H), lambda i: (i, 0)),
        compiler_params=pltpu.CompilerParams(
            dimension_semantics=("parallel",)),
    )(x, gamma.reshape(1, H), beta.reshape(1, H))


def pallas_attention(qkv, ext_mask, num_heads):
    """Fused multi-head self-attention, one grid step per batch element.

    qkv:      [B, S, 3H]  (Q | K | V packed along the last axis)
    ext_mask: [B, 1, S]   additive attention mask (-10000 on masked keys)
    returns   [B, S, H]   context in [B, S, H] layout (no head transposes in HBM).
    """
    B, S, H3 = qkv.shape
    H = H3 // 3
    dh = H // num_heads
    scale = 1.0 / math.sqrt(dh)

    def kernel(qkv_ref, m_ref, o_ref):
        m = m_ref[0]  # (1, S), broadcasts over query rows
        # Heads are static lane-column slices of the packed QKV block.
        for h in range(num_heads):
            lo = h * dh
            qh = qkv_ref[0, :, lo:lo + dh]                     # (S, dh)
            kh = qkv_ref[0, :, H + lo:H + lo + dh]             # (S, dh)
            vh = qkv_ref[0, :, 2 * H + lo:2 * H + lo + dh]     # (S, dh)
            # Q . K^T without materializing a transpose (contract last dims).
            s = jax.lax.dot_general(
                qh, kh, (((1,), (1,)), ((), ())),
                preferred_element_type=jnp.float32) * scale + m
            s = s - jnp.max(s, axis=-1, keepdims=True)
            p = jnp.exp(s)
            p = p * pl.reciprocal(jnp.sum(p, axis=-1, keepdims=True), approx=True)
            o_ref[0, :, lo:lo + dh] = jax.lax.dot_general(
                p, vh, (((1,), (0,)), ((), ())),
                preferred_element_type=jnp.float32)

    return pl.pallas_call(
        kernel,
        out_shape=jax.ShapeDtypeStruct((B, S, H), jnp.float32),
        grid=(B,),
        in_specs=[
            pl.BlockSpec((1, S, H3), lambda b: (b, 0, 0)),
            pl.BlockSpec((1, 1, S), lambda b: (b, 0, 0)),
        ],
        out_specs=pl.BlockSpec((1, S, H), lambda b: (b, 0, 0)),
        compiler_params=pltpu.CompilerParams(
            dimension_semantics=("parallel",)),
    )(qkv, ext_mask)


def pallas_att_pool(hidden, att_query):
    """'att' pooling: softmax((hidden * q).sum(-1)) weighted sum over seq.  hidden: [B, S, H]."""
    B, S, H = hidden.shape

    def kernel(h_ref, q_ref, o_ref):
        h = h_ref[0]                                   # (S, H)
        q = q_ref[...]                                 # (1, H)
        dot = jnp.sum(h * q, axis=-1, keepdims=True)   # (S, 1)
        dot = dot - jnp.max(dot, axis=0, keepdims=True)
        e = jnp.exp(dot)
        w = e * pl.reciprocal(jnp.sum(e, axis=0, keepdims=True), approx=True)
        o_ref[0] = jnp.sum(h * w, axis=0, keepdims=True)

    out = pl.pallas_call(
        kernel,
        out_shape=jax.ShapeDtypeStruct((B, 1, H), jnp.float32),
        grid=(B,),
        in_specs=[
            pl.BlockSpec((1, S, H), lambda b: (b, 0, 0)),
            pl.BlockSpec((1, H), lambda b: (0, 0)),
        ],
        out_specs=pl.BlockSpec((1, 1, H), lambda b: (b, 0, 0)),
        compiler_params=pltpu.CompilerParams(dimension_semantics=("parallel",)),
    )(hidden, att_query.reshape(1, H))
    return out[:, 0, :]


# ----------------------------------------------------------------------------
# Model pieces (wrappers around the kernels)
# ----------------------------------------------------------------------------

def image_encoder(params, img_nchw, cfg):
    """ImageEncoder: (synthetic) conv backbone + AdaptiveAvgPool2d((N, 1)) -> [B, N, img_hidden]."""
    # layout: NCHW -> NHWC for the kernel path.
    x = jnp.transpose(img_nchw, (0, 2, 3, 1)).astype(jnp.float32)
    B, H, W, C = x.shape
    kh = kw = 3
    stride, pad = 2, 1
    xp = jnp.pad(x, ((0, 0), (pad, pad), (pad, pad), (0, 0)))
    oh = (H + 2 * pad - kh) // stride + 1
    ow = (W + 2 * pad - kw) // stride + 1
    patches = []
    for i in range(kh):
        for j in range(kw):
            patches.append(xp[:, i:i + stride * oh:stride, j:j + stride * ow:stride, :])
    patches = jnp.concatenate(patches, axis=-1)                # [B, oh, ow, kh*kw*C]
    flat = patches.reshape(B * oh * ow, kh * kw * C)
    feat = pallas_linear(flat, params["conv_w"], params["conv_b"], act="relu")
    feat = feat.reshape(B, oh, ow, cfg["img_hidden"])

    # AdaptiveAvgPool2d((num_image_embeds, 1)) + flatten(start_dim=2) + transpose(1, 2)
    n = cfg["num_image_embeds"]
    fw = jnp.mean(feat, axis=2)                                # mean over W -> [B, oh, Cfeat]
    rows = []
    for i in range(n):
        s = (i * oh) // n
        e = -(-((i + 1) * oh) // n)                            # ceil
        rows.append(jnp.mean(fw[:, s:e, :], axis=1))
    return jnp.stack(rows, axis=1)                             # [B, N, img_hidden]


def image_bert_embeddings(params, img_feats, cfg):
    B, N, D = img_feats.shape
    H = cfg["hidden"]
    proj = pallas_linear(img_feats.reshape(B * N, D), params["img_w"], params["img_b"])
    proj = proj.reshape(B, N, H)
    cls_e = jnp.broadcast_to(params["word_emb"][cfg["cls_id"]][None, None, :], (B, 1, H))
    sep_e = jnp.broadcast_to(params["word_emb"][cfg["sep_id"]][None, None, :], (B, 1, H))
    tok = jnp.concatenate([cls_e, proj, sep_e], axis=1)        # [B, N+2, H]
    seq = N + 2
    pos = params["pos_emb"][:seq][None, :, :]
    img_tok_ids = jnp.zeros((B, seq), jnp.int32)               # img_tok filled with 0
    ttype = jnp.take(params["type_emb"], img_tok_ids, axis=0)
    emb = tok + pos + ttype
    emb = pallas_layernorm(emb.reshape(B * seq, H), params["emb_ln_g"], params["emb_ln_b"])
    return emb.reshape(B, seq, H)


def txt_embeddings(params, input_txt, segment, cfg):
    B, L = input_txt.shape
    H = cfg["hidden"]
    we = jnp.take(params["word_emb"], input_txt, axis=0)
    pe = params["pos_emb"][:L][None, :, :]
    te = jnp.take(params["type_emb"], segment, axis=0)
    emb = we + pe + te
    emb = pallas_layernorm(emb.reshape(B * L, H), params["emb_ln_g"], params["emb_ln_b"])
    return emb.reshape(B, L, H)


def bert_layer(lp, x, ext_mask, cfg):
    B, S, H = x.shape
    nh = cfg["heads"]
    x2 = x.reshape(B * S, H)

    # Fused Q/K/V projection: single matmul against the concatenated [H, 3H] weight.
    qkv = pallas_linear(x2, lp["w_qkv"], lp["b_qkv"])          # [B*S, 3H]
    ctx = pallas_attention(qkv.reshape(B, S, 3 * H), ext_mask, nh)   # [B, S, H]
    ctx = ctx.reshape(B * S, H)

    # Attention output projection + residual + layernorm (fused epilogue).
    attn_out = pallas_linear(ctx, lp["wo"], lp["bo"],
                             residual=x2, ln_gamma=lp["ln1_g"], ln_beta=lp["ln1_b"])

    # FFN: intermediate (bias+gelu fused), then output + residual + layernorm (fused).
    inter = pallas_linear(attn_out, lp["wi"], lp["bi"], act="gelu")
    out = pallas_linear(inter, lp["wo2"], lp["bo2"],
                        residual=attn_out, ln_gamma=lp["ln2_g"], ln_beta=lp["ln2_b"])
    return out.reshape(B, S, H)


def multimodal_bert_encoder_forward(params, input_txt, attention_mask, segment, input_img, cfg):
    B = input_txt.shape[0]
    n_img_tok = cfg["num_image_embeds"] + 2

    # extended attention mask (image tokens always attended)
    full_mask = jnp.concatenate(
        [jnp.ones((B, n_img_tok), jnp.float32), attention_mask.astype(jnp.float32)], axis=1)
    ext_mask = (1.0 - full_mask) * -10000.0                    # [B, S_total]
    ext_mask = ext_mask[:, None, :]                            # [B, 1, S_total]

    img = image_encoder(params, input_img, cfg)                # [B, N, img_hidden]
    img_embed_out = image_bert_embeddings(params, img, cfg)    # [B, N+2, H]
    txt_embed_out = txt_embeddings(params, input_txt, segment, cfg)  # [B, Lt, H]
    x = jnp.concatenate([img_embed_out, txt_embed_out], axis=1)

    for lp in params["layers"]:
        x = bert_layer(lp, x, ext_mask, cfg)

    # args.pooling == 'att'
    weighted_sum = pallas_att_pool(x, params["att_query"])     # [B, H]
    output = pallas_linear(weighted_sum, params["pool_w"], params["pool_b"], act="tanh")
    return output


# ----------------------------------------------------------------------------
# Deterministic parameter init
# ----------------------------------------------------------------------------

def init_params(key, cfg):
    H, I, V = cfg["hidden"], cfg["inter"], cfg["vocab"]
    keys = iter(jax.random.split(key, 64))

    def nrm(shape, scale=0.02):
        return jax.random.normal(next(keys), shape, jnp.float32) * scale

    p = {
        "word_emb": nrm((V, H)),
        "pos_emb": nrm((cfg["max_pos"], H)),
        "type_emb": nrm((cfg["type_vocab"], H)),
        "emb_ln_g": jnp.ones((H,), jnp.float32),
        "emb_ln_b": jnp.zeros((H,), jnp.float32),
        "conv_w": nrm((3 * 3 * cfg["img_channels"], cfg["img_hidden"]), 0.1),
        "conv_b": jnp.zeros((cfg["img_hidden"],), jnp.float32),
        "img_w": nrm((cfg["img_hidden"], H)),
        "img_b": jnp.zeros((H,), jnp.float32),
        "att_query": jax.random.uniform(next(keys), (H,), jnp.float32),  # torch.rand
        "pool_w": nrm((H, H)),
        "pool_b": jnp.zeros((H,), jnp.float32),
        "clf_w": nrm((H, cfg["n_classes"])),   # defined for parity; not used in forward
        "clf_b": jnp.zeros((cfg["n_classes"],), jnp.float32),
        "layers": [],
    }
    for _ in range(cfg["num_layers"]):
        wq, wk, wv = nrm((H, H)), nrm((H, H)), nrm((H, H))
        p["layers"].append({
            # Q/K/V weights pre-concatenated for the fused projection.
            "w_qkv": jnp.concatenate([wq, wk, wv], axis=1),            # [H, 3H]
            "b_qkv": jnp.zeros((3 * H,), jnp.float32),
            "wo": nrm((H, H)), "bo": jnp.zeros((H,), jnp.float32),
            "ln1_g": jnp.ones((H,), jnp.float32), "ln1_b": jnp.zeros((H,), jnp.float32),
            "wi": nrm((H, I)), "bi": jnp.zeros((I,), jnp.float32),
            "wo2": nrm((I, H)), "bo2": jnp.zeros((H,), jnp.float32),
            "ln2_g": jnp.ones((H,), jnp.float32), "ln2_b": jnp.zeros((H,), jnp.float32),
        })
    return p


# ----------------------------------------------------------------------------
# Main
# ----------------------------------------------------------------------------

if __name__ == "__main__":
    cfg = dict(
        hidden=32, heads=4, num_layers=2, inter=64,
        vocab=100, max_pos=64, type_vocab=2,
        num_image_embeds=4, img_hidden=64, img_channels=4, img_size=16,
        n_classes=3, txt_len=8, batch=2, cls_id=2, sep_id=3, pooling="att",
    )

    key = jax.random.PRNGKey(0)
    pkey, dkey = jax.random.split(key)
    params = init_params(pkey, cfg)

    k1, k2 = jax.random.split(dkey)
    B, Lt = cfg["batch"], cfg["txt_len"]
    input_txt = jax.random.randint(k1, (B, Lt), 0, cfg["vocab"], dtype=jnp.int32)
    attention_mask = jnp.concatenate(
        [jnp.ones((B, Lt - 2), jnp.int32), jnp.zeros((B, 2), jnp.int32)], axis=1)
    segment = jnp.zeros((B, Lt), jnp.int32)
    input_img = jax.random.normal(
        k2, (B, cfg["img_channels"], cfg["img_size"], cfg["img_size"]), jnp.float32)

    out = multimodal_bert_encoder_forward(
        params, input_txt, attention_mask, segment, input_img, cfg)
    jax.block_until_ready(out)
    assert out.shape == (B, cfg["hidden"]) and out.dtype == jnp.float32
    print("KERNEL_OK")
</pallas_src>

<mosaic_0001>
module attributes {stable_mosaic.version = 11 : i64} {
  func.func @kernel(%arg0: i32, %arg1: i32, %arg2: i32, %arg3: memref<128x36xf32, #tpu.memory_space<vmem>>, %arg4: memref<36x64xf32, #tpu.memory_space<vmem>>, %arg5: memref<1x64xf32, #tpu.memory_space<vmem>>, %arg6: memref<128x64xf32, #tpu.memory_space<vmem>>, %arg7: memref<128x64xf32, #tpu.memory_space<vmem>>) attributes {dimension_semantics = [#tpu.dimension_semantics<parallel>, #tpu.dimension_semantics<parallel>, #tpu.dimension_semantics<arbitrary>], iteration_bounds = array<i64: 1, 1, 1>, scalar_prefetch = 0 : i64, scratch_operands = 1 : i64, tpu.core_type = #tpu.core_type<tc>, window_params = [{transform_indices = @transform_0, window_bounds = array<i64: 128, 36>}, {transform_indices = @transform_1, window_bounds = array<i64: 36, 64>}, {transform_indices = @transform_2, window_bounds = array<i64: 1, 64>}, {transform_indices = @transform_3, window_bounds = array<i64: 128, 64>}]} {
    %c0_i32 = arith.constant 0 : i32
    %0 = arith.cmpi eq, %arg2, %c0_i32 : i32
    %1 = arith.extui %0 : i1 to i32
    %c0_i32_0 = arith.constant 0 : i32
    %2 = arith.cmpi ne, %1, %c0_i32_0 : i32
    scf.if %2 {
      %cst_10 = arith.constant 0.000000e+00 : f32
      %14 = vector.broadcast %cst_10 : f32 to vector<128x64xf32>
      %c0_11 = arith.constant 0 : index
      %c0_12 = arith.constant 0 : index
      %15 = vector.load %arg7[%c0_11, %c0_12] : memref<128x64xf32, #tpu.memory_space<vmem>>, vector<128x64xf32>
      tpu.vector_store %arg7[%c0_11, %c0_12], %14 {strides = array<i32>} : memref<128x64xf32, #tpu.memory_space<vmem>>, vector<128x64xf32>,
    } else {
    }
    %c0 = arith.constant 0 : index
    %c0_1 = arith.constant 0 : index
    %3 = vector.load %arg7[%c0, %c0_1] : memref<128x64xf32, #tpu.memory_space<vmem>>, vector<128x64xf32>
    %c0_2 = arith.constant 0 : index
    %c0_3 = arith.constant 0 : index
    %4 = vector.load %arg3[%c0_2, %c0_3] : memref<128x36xf32, #tpu.memory_space<vmem>>, vector<128x36xf32>
    %5 = arith.truncf %4 : vector<128x36xf32> to vector<128x36xbf16>
    %c0_4 = arith.constant 0 : index
    %c0_5 = arith.constant 0 : index
    %6 = vector.load %arg4[%c0_4, %c0_5] : memref<36x64xf32, #tpu.memory_space<vmem>>, vector<36x64xf32>
    %7 = arith.truncf %6 : vector<36x64xf32> to vector<36x64xbf16>
    %cst = arith.constant dense<0.000000e+00> : vector<128x64xf32>
    %8 = tpu.matmul %5, %7, %cst {dimension_numbers = #tpu.dot_dimension_numbers<[1], [0], [0], [1], [0, 0, 1, 1], [], []>} : vector<128x36xbf16>, vector<36x64xbf16>, vector<128x64xf32> -> vector<128x64xf32>
    %9 = arith.addf %3, %8 : vector<128x64xf32>
    %c0_6 = arith.constant 0 : index
    %c0_7 = arith.constant 0 : index
    %10 = vector.load %arg7[%c0_6, %c0_7] : memref<128x64xf32, #tpu.memory_space<vmem>>, vector<128x64xf32>
    tpu.vector_store %arg7[%c0_6, %c0_7], %9 {strides = array<i32>} : memref<128x64xf32, #tpu.memory_space<vmem>>, vector<128x64xf32>,
    %c0_i32_8 = arith.constant 0 : i32
    %11 = arith.cmpi eq, %arg2, %c0_i32_8 : i32
    %12 = arith.extui %11 : i1 to i32
    %c0_i32_9 = arith.constant 0 : i32
    %13 = arith.cmpi ne, %12, %c0_i32_9 : i32
    scf.if %13 {
      %c0_10 = arith.constant 0 : index
      %c0_11 = arith.constant 0 : index
      %14 = vector.load %arg7[%c0_10, %c0_11] : memref<128x64xf32, #tpu.memory_space<vmem>>, vector<128x64xf32>
      %c0_12 = arith.constant 0 : index
      %c0_13 = arith.constant 0 : index
      %15 = vector.load %arg5[%c0_12, %c0_13] : memref<1x64xf32, #tpu.memory_space<vmem>>, vector<1x64xf32>
      %16 = vector.broadcast %15 : vector<1x64xf32> to vector<128x64xf32>
      %17 = arith.addf %14, %16 : vector<128x64xf32>
      %cst_14 = arith.constant 0.000000e+00 : f32
      %18 = vector.broadcast %cst_14 : f32 to vector<128x64xf32>
      %19 = arith.maximumf %17, %18 : vector<128x64xf32>
      %c0_15 = arith.constant 0 : index
      %c0_16 = arith.constant 0 : index
      %20 = vector.load %arg6[%c0_15, %c0_16] : memref<128x64xf32, #tpu.memory_space<vmem>>, vector<128x64xf32>
      tpu.vector_store %arg6[%c0_15, %c0_16], %19 {strides = array<i32>} : memref<128x64xf32, #tpu.memory_space<vmem>>, vector<128x64xf32>,
    } else {
    }
    return
  }
  func.func @transform_0(%arg0: i32, %arg1: i32, %arg2: i32) -> (i32, i32) {
    %c0_i32 = arith.constant 0 : i32
    return %arg0, %arg2 : i32, i32
  }
  func.func @transform_1(%arg0: i32, %arg1: i32, %arg2: i32) -> (i32, i32) {
    %c0_i32 = arith.constant 0 : i32
    return %arg2, %arg1 : i32, i32
  }
  func.func @transform_2(%arg0: i32, %arg1: i32, %arg2: i32) -> (i32, i32) {
    %c0_i32 = arith.constant 0 : i32
    %c0_i32_0 = arith.constant 0 : i32
    return %c0_i32, %arg1 : i32, i32
  }
  func.func @transform_3(%arg0: i32, %arg1: i32, %arg2: i32) -> (i32, i32) {
    %c0_i32 = arith.constant 0 : i32
    return %arg0, %arg1 : i32, i32
  }
}

</mosaic_0001>

<bundles_post_ra>
// kernel: tpu_custom_call.1
= control target key start
LH: loop header
LB: loop body
LE: loop exit
PB: predicated region body
PF: predicated region fallthrough
CT: control target
= control target key end

     0   :  { %vm19_vm0 = vcmask 523264   ;;  %vm109_vm1 = vcmask 1041408   ;;  %v372_v3 = vmov 0.0   ;;  %vm84_vm2 = vcmask 293888   ;;  %s584_s1 = inlined_call_operand.vmem [shape: f32[36,64], index: 1, kind: input, shape index: {}]   ;;  %s585_s0 = inlined_call_operand.vmem [shape: f32[128,36], index: 0, kind: input, shape index: {}]   ;;  %s586_s2 = inlined_call_operand.vmem [shape: f32[1,64], index: 2, kind: input, shape index: {}]   ;;  %s587_s3 = inlined_call_operand.vmem [shape: f32[128,64], index: 3, kind: output, shape index: {}]  }
   0x1   :  { %v80_v0 = vld [vmem:[%s584_s1 + $0x20] sm:$0xf]  ;;  %v78_v1 = vld [vmem:[%s584_s1 + $0x10] sm:$0xff]  ;;  %v79_v2 = vld [vmem:[%s584_s1 + $0x18] sm:$0xff]  ;;  %22 = vst.msk [vmem:[#allocation2 + $0x10] sm:$0xff] %vm19_vm0, %v372_v3 }
   0x2   :  { %20 = vst.msk [vmem:[#allocation2] sm:$0xff] %vm19_vm0, %v372_v3  ;;  %21 = vst.msk [vmem:[#allocation2 + $0x8] sm:$0xff] %vm19_vm0, %v372_v3  ;;  %v83_v4 = vpack.c.bf16 %v80_v0, %v80_v0  ;;  %v82_v5 = vpack.c.bf16 %v79_v2, %v78_v1  ;;  %v76_v6 = vld [vmem:[%s584_s1] sm:$0xff]  ;;  %v77_v7 = vld [vmem:[%s584_s1 + $0x8] sm:$0xff] }
   0x3   :  { %23 = vst.msk [vmem:[#allocation2 + $0x18] sm:$0xff] %vm19_vm0, %v372_v3  ;;  %24 = vst.msk [vmem:[#allocation2 + $0x20] sm:$0xff] %vm19_vm0, %v372_v3  ;;  %v52_v8 = vld [vmem:[%s585_s0] sm:$0xff]  ;;  %v53_v9 = vld [vmem:[%s585_s0 + $0x8] sm:$0xff]  ;;  %v81_v15 = vpack.c.bf16 %v77_v7, %v76_v6 }
   0x4   :  { %25 = vst.msk [vmem:[#allocation2 + $0x28] sm:$0xff] %vm19_vm0, %v372_v3  ;;  %26 = vst.msk [vmem:[#allocation2 + $0x30] sm:$0xff] %vm19_vm0, %v372_v3  ;;  %v60_v10 = vld [vmem:[%s585_s0 + $0x40] sm:$0xff]  ;;  %v61_v11 = vld [vmem:[%s585_s0 + $0x48] sm:$0xff]  ;;  %369 = vmatprep.subr.msk.bf16.mxu0 %vm109_vm1, %v83_v4  ;;  %370 = vmatprep.subr.msk.bf16.mxu1 %vm109_vm1, %v83_v4  ;;  %v111_v12 = vsel %vm109_vm1, %v83_v4, 0  ;;  %v68_v13 = vpack.c.bf16 %v53_v9, %v52_v8 }
   0x5   :  { %27 = vst.msk [vmem:[#allocation2 + $0x38] sm:$0xff] %vm19_vm0, %v372_v3  ;;  %28 = vst.msk [vmem:[#allocation2 + $0x40] sm:$0xff] %vm19_vm0, %v372_v3  ;;  %v72_v14 = vpack.c.bf16 %v61_v11, %v60_v10  ;;  %342 = vmatpush3.bf16.msra.mxu0 %v111_v12  ;;  %366 = vmatpush3.bf16.msra.mxu1 %v111_v12  ;;  %v54_v16 = vld [vmem:[%s585_s0 + $0x10] sm:$0xff]  ;;  %v55_v17 = vld [vmem:[%s585_s0 + $0x18] sm:$0xff] }
   0x6   :  { %29 = vst.msk [vmem:[#allocation2 + $0x48] sm:$0xff] %vm19_vm0, %v372_v3  ;;  %30 = vst.msk [vmem:[#allocation2 + $0x50] sm:$0xff] %vm19_vm0, %v372_v3  ;;  %343 = vmatprep.subr.bf16.mxu0 %v82_v5  ;;  %364 = vmatprep.subr.bf16.mxu1 %v82_v5  ;;  %v62_v18 = vld [vmem:[%s585_s0 + $0x50] sm:$0xff]  ;;  %v63_v19 = vld [vmem:[%s585_s0 + $0x58] sm:$0xff]  ;;  %v69_v24 = vpack.c.bf16 %v55_v17, %v54_v16 }
   0x7   :  { %31 = vst.msk [vmem:[#allocation2 + $0x58] sm:$0xff] %vm19_vm0, %v372_v3  ;;  %32 = vst.msk [vmem:[#allocation2 + $0x60] sm:$0xff] %vm19_vm0, %v372_v3  ;;  %347 = vmatprep.mubr.msk.bf16.mxu0 %vm84_vm2, %v68_v13  ;;  %355 = vmatprep.mubr.msk.bf16.mxu1 %vm84_vm2, %v72_v14  ;;  %v56_v20 = vld [vmem:[%s585_s0 + $0x20] sm:$0xff]  ;;  %v57_v21 = vld [vmem:[%s585_s0 + $0x28] sm:$0xff]  ;;  %v73_v25 = vpack.c.bf16 %v63_v19, %v62_v18 }
   0x8   :  { %33 = vst.msk [vmem:[#allocation2 + $0x68] sm:$0xff] %vm19_vm0, %v372_v3  ;;  %34 = vst.msk [vmem:[#allocation2 + $0x70] sm:$0xff] %vm19_vm0, %v372_v3  ;;  %v64_v22 = vld [vmem:[%s585_s0 + $0x60] sm:$0xff]  ;;  %v65_v23 = vld [vmem:[%s585_s0 + $0x68] sm:$0xff]  ;;  %v70_v26 = vpack.c.bf16 %v57_v21, %v56_v20 }
   0x9   :  { %35 = vst.msk [vmem:[#allocation2 + $0x78] sm:$0xff] %vm19_vm0, %v372_v3  ;;  %344 = vmatpush3.bf16.msra.mxu0 %v82_v5  ;;  %367 = vmatpush3.bf16.msra.mxu1 %v82_v5  ;;  %v74_v27 = vpack.c.bf16 %v65_v23, %v64_v22  ;;  %v58_v28 = vld [vmem:[%s585_s0 + $0x30] sm:$0xff]  ;;  %v59_v29 = vld [vmem:[%s585_s0 + $0x38] sm:$0xff]  ;;  %v36_v38 = vld [vmem:[#allocation2] sm:$0xff] }
   0xa   :  { %345 = vmatprep.subr.bf16.mxu0 %v81_v15  ;;  %365 = vmatprep.subr.bf16.mxu1 %v81_v15  ;;  %v66_v30 = vld [vmem:[%s585_s0 + $0x70] sm:$0xff]  ;;  %v67_v31 = vld [vmem:[%s585_s0 + $0x78] sm:$0xff]  ;;  %v71_v32 = vpack.c.bf16 %v59_v29, %v58_v28  ;;  %v37_v50 = vld [vmem:[#allocation2 + $0x8] sm:$0xff] }
   0xb   :  { %v75_v33 = vpack.c.bf16 %v67_v31, %v66_v30  ;;  %v38_v34 = vld [vmem:[#allocation2 + $0x10] sm:$0xff]  ;;  %v39_v44 = vld [vmem:[#allocation2 + $0x18] sm:$0xff]  ;;  %v492_v60 = vld [vmem:[%s586_s2] ss:$0 sm:$0xff] }
   0xc   :  { %v44_v39 = vld [vmem:[#allocation2 + $0x40] sm:$0xff]  ;;  %v42_v56 = vld [vmem:[#allocation2 + $0x30] sm:$0xff]  ;;  %v43_v11 = vld [vmem:[#allocation2 + $0x38] sm:$0xff] }
   0xd   :  { %346 = vmatpush3.bf16.msra.mxu0 %v81_v15  ;;  %368 = vmatpush3.bf16.msra.mxu1 %v81_v15  ;;  %v46_v35 = vld [vmem:[#allocation2 + $0x50] sm:$0xff]  ;;  %v45_v51 = vld [vmem:[#allocation2 + $0x48] sm:$0xff]  ;;  %v40_v63 = vld [vmem:[#allocation2 + $0x20] sm:$0xff] }
   0xe   :  { %v47_v45 = vld [vmem:[#allocation2 + $0x58] sm:$0xff]  ;;  %v48_v0 = vld [vmem:[#allocation2 + $0x60] sm:$0xff]  ;;  %v41_v21 = vld [vmem:[#allocation2 + $0x28] sm:$0xff] }
   0xf   :  { %v50_v57 = vld [vmem:[#allocation2 + $0x70] sm:$0xff]  ;;  %v49_v22 = vld [vmem:[#allocation2 + $0x68] sm:$0xff] }
  0x10   :  { %348 = vmatmul.mubr.msk.bf16.vlgmr.msra.gmra.mxu0 %vm84_vm2, %v69_v24  ;;  %356 = vmatmul.mubr.msk.bf16.vlgmr.msra.gmra.mxu1 %vm84_vm2, %v73_v25  ;;  %v51_v12 = vld [vmem:[#allocation2 + $0x78] sm:$0xff] }
  0x11   :  { %351 = vmatprep.mubr.msk.bf16.mxu0 %vm84_vm2, %v70_v26  ;;  %359 = vmatprep.mubr.msk.bf16.mxu1 %vm84_vm2, %v74_v27 }
  0x18   :  { %352 = vmatmul.mubr.msk.bf16.gmra.mxu0 %vm84_vm2, %v71_v32  ;;  %360 = vmatmul.mubr.msk.bf16.gmra.mxu1 %vm84_vm2, %v75_v33 }
  0xd0   :  { %v349_v36 = vpop.f32.mrf.mxu0  ;;  %v357_v37 = vpop.f32.mrf.mxu1 }
  0xd1   :  { %v212_v40 = vadd.f32 %v349_v36, %v38_v34  ;;  %v220_v41 = vadd.f32 %v357_v37, %v46_v35 }
  0xd2   :  { %v147_v42 = vpop.f32.mrf.mxu0  ;;  %v179_v43 = vpop.f32.mrf.mxu1 }
  0xd3   :  { %229 = vst.msk [vmem:[#allocation2 + $0x10] sm:$0xff] %vm19_vm0, %v212_v40  ;;  %237 = vst.msk [vmem:[#allocation2 + $0x50] sm:$0xff] %vm19_vm0, %v220_v41  ;;  %v210_v46 = vadd.f32 %v147_v42, %v36_v38  ;;  %v218_v47 = vadd.f32 %v179_v43, %v44_v39 }
  0xd4   :  { %v350_v48 = vpop.f32.mrf.mxu0  ;;  %v358_v49 = vpop.f32.mrf.mxu1 }
  0xd5   :  { %227 = vst.msk [vmem:[#allocation2] sm:$0xff] %vm19_vm0, %v210_v46  ;;  %235 = vst.msk [vmem:[#allocation2 + $0x40] sm:$0xff] %vm19_vm0, %v218_v47  ;;  %v213_v52 = vadd.f32 %v350_v48, %v39_v44  ;;  %v221_v53 = vadd.f32 %v358_v49, %v47_v45 }
  0xd6   :  { %v150_v54 = vpop.f32.mrf.mxu0  ;;  %v182_v55 = vpop.f32.mrf.mxu1 }
  0xd7   :  { %230 = vst.msk [vmem:[#allocation2 + $0x18] sm:$0xff] %vm19_vm0, %v213_v52  ;;  %238 = vst.msk [vmem:[#allocation2 + $0x58] sm:$0xff] %vm19_vm0, %v221_v53  ;;  %v211_v58 = vadd.f32 %v150_v54, %v37_v50  ;;  %v219_v59 = vadd.f32 %v182_v55, %v45_v51 }
  0xd8   :  { %v353_v61 = vpop.f32.mrf.mxu0  ;;  %v361_v62 = vpop.f32.mrf.mxu1 }
  0xd9   :  { %228 = vst.msk [vmem:[#allocation2 + $0x8] sm:$0xff] %vm19_vm0, %v211_v58  ;;  %236 = vst.msk [vmem:[#allocation2 + $0x48] sm:$0xff] %vm19_vm0, %v219_v59  ;;  %v216_v1 = vadd.f32 %v353_v61, %v42_v56  ;;  %v224_v2 = vadd.f32 %v361_v62, %v50_v57 }
  0xda   :  { %v248_v3 = vld [vmem:[#allocation2 + $0x10] sm:$0xff]  ;;  %v163_v5 = vpop.f32.mrf.mxu0  ;;  %v195_v6 = vpop.f32.mrf.mxu1 }
  0xdb   :  { %v256_v4 = vld [vmem:[#allocation2 + $0x50] sm:$0xff]  ;;  %v271_v7 = vadd.f32 %v492_v60, %v248_v3  ;;  %233 = vst.msk [vmem:[#allocation2 + $0x30] sm:$0xff] %vm19_vm0, %v216_v1  ;;  %241 = vst.msk [vmem:[#allocation2 + $0x70] sm:$0xff] %vm19_vm0, %v224_v2  ;;  %v214_v9 = vadd.f32 %v163_v5, %v40_v63  ;;  %v222_v10 = vadd.f32 %v195_v6, %v48_v0 }
  0xdc   :  { %v279_v8 = vadd.f32 %v492_v60, %v256_v4  ;;  %v246_v13 = vld [vmem:[#allocation2] sm:$0xff]  ;;  %v354_v15 = vpop.f32.mrf.mxu0  ;;  %v362_v16 = vpop.f32.mrf.mxu1 }
  0xdd   :  { %v254_v14 = vld [vmem:[#allocation2 + $0x40] sm:$0xff]  ;;  %v287_v17 = vmax.f32 %v271_v7, 0.0  ;;  %v269_v19 = vadd.f32 %v492_v60, %v246_v13  ;;  %231 = vst.msk [vmem:[#allocation2 + $0x20] sm:$0xff] %vm19_vm0, %v214_v9  ;;  %239 = vst.msk [vmem:[#allocation2 + $0x60] sm:$0xff] %vm19_vm0, %v222_v10  ;;  %v217_v25 = vadd.f32 %v354_v15, %v43_v11  ;;  %v225_v26 = vadd.f32 %v362_v16, %v51_v12 }
  0xde   :  { %v295_v18 = vmax.f32 %v279_v8, 0.0  ;;  %v277_v20 = vadd.f32 %v492_v60, %v254_v14  ;;  %v249_v23 = vld [vmem:[#allocation2 + $0x18] sm:$0xff]  ;;  %v166_v27 = vpop.f32.mrf.mxu0  ;;  %v198_v28 = vpop.f32.mrf.mxu1 }
  0xdf   :  { %v257_v24 = vld [vmem:[#allocation2 + $0x58] sm:$0xff]  ;;  %303 = vst.msk [vmem:[%s587_s3 + $0x10] sm:$0xff] %vm19_vm0, %v287_v17  ;;  %v285_v29 = vmax.f32 %v269_v19, 0.0  ;;  %v272_v31 = vadd.f32 %v492_v60, %v249_v23  ;;  %234 = vst.msk [vmem:[#allocation2 + $0x38] sm:$0xff] %vm19_vm0, %v217_v25  ;;  %v215_v35 = vadd.f32 %v166_v27, %v41_v21  ;;  %v223_v36 = vadd.f32 %v198_v28, %v49_v22 }
  0xe0   :  { %311 = vst.msk [vmem:[%s587_s3 + $0x50] sm:$0xff] %vm19_vm0, %v295_v18  ;;  %v293_v30 = vmax.f32 %v277_v20, 0.0  ;;  %v280_v32 = vadd.f32 %v492_v60, %v257_v24  ;;  %v247_v33 = vld [vmem:[#allocation2 + $0x8] sm:$0xff]  ;;  %242 = vst.msk [vmem:[#allocation2 + $0x78] sm:$0xff] %vm19_vm0, %v225_v26 }
  0xe1   :  { %v255_v34 = vld [vmem:[#allocation2 + $0x48] sm:$0xff]  ;;  %301 = vst.msk [vmem:[%s587_s3] sm:$0xff] %vm19_vm0, %v285_v29  ;;  %v288_v37 = vmax.f32 %v272_v31, 0.0  ;;  %v270_v39 = vadd.f32 %v492_v60, %v247_v33  ;;  %232 = vst.msk [vmem:[#allocation2 + $0x28] sm:$0xff] %vm19_vm0, %v215_v35 }
  0xe2   :  { %309 = vst.msk [vmem:[%s587_s3 + $0x40] sm:$0xff] %vm19_vm0, %v293_v30  ;;  %v296_v38 = vmax.f32 %v280_v32, 0.0  ;;  %v278_v40 = vadd.f32 %v492_v60, %v255_v34  ;;  %v252_v41 = vld [vmem:[#allocation2 + $0x30] sm:$0xff]  ;;  %240 = vst.msk [vmem:[#allocation2 + $0x68] sm:$0xff] %vm19_vm0, %v223_v36 }
  0xe3   :  { %v260_v42 = vld [vmem:[#allocation2 + $0x70] sm:$0xff]  ;;  %304 = vst.msk [vmem:[%s587_s3 + $0x18] sm:$0xff] %vm19_vm0, %v288_v37  ;;  %v286_v43 = vmax.f32 %v270_v39, 0.0  ;;  %v275_v45 = vadd.f32 %v492_v60, %v252_v41 }
  0xe4   :  { %312 = vst.msk [vmem:[%s587_s3 + $0x58] sm:$0xff] %vm19_vm0, %v296_v38  ;;  %v294_v44 = vmax.f32 %v278_v40, 0.0  ;;  %v283_v46 = vadd.f32 %v492_v60, %v260_v42  ;;  %v250_v47 = vld [vmem:[#allocation2 + $0x20] sm:$0xff] }
  0xe5   :  { %v258_v48 = vld [vmem:[#allocation2 + $0x60] sm:$0xff]  ;;  %302 = vst.msk [vmem:[%s587_s3 + $0x8] sm:$0xff] %vm19_vm0, %v286_v43  ;;  %v291_v49 = vmax.f32 %v275_v45, 0.0  ;;  %v273_v51 = vadd.f32 %v492_v60, %v250_v47 }
  0xe6   :  { %310 = vst.msk [vmem:[%s587_s3 + $0x48] sm:$0xff] %vm19_vm0, %v294_v44  ;;  %v299_v50 = vmax.f32 %v283_v46, 0.0  ;;  %v281_v52 = vadd.f32 %v492_v60, %v258_v48  ;;  %v253_v55 = vld [vmem:[#allocation2 + $0x38] sm:$0xff] }
  0xe7   :  { %307 = vst.msk [vmem:[%s587_s3 + $0x30] sm:$0xff] %vm19_vm0, %v291_v49  ;;  %v289_v53 = vmax.f32 %v273_v51, 0.0  ;;  %v261_v56 = vld [vmem:[#allocation2 + $0x78] sm:$0xff]  ;;  %v276_v57 = vadd.f32 %v492_v60, %v253_v55 }
  0xe8   :  { %315 = vst.msk [vmem:[%s587_s3 + $0x70] sm:$0xff] %vm19_vm0, %v299_v50  ;;  %v297_v54 = vmax.f32 %v281_v52, 0.0  ;;  %v284_v58 = vadd.f32 %v492_v60, %v261_v56  ;;  %v251_v59 = vld [vmem:[#allocation2 + $0x28] sm:$0xff] }
  0xe9   :  { %305 = vst.msk [vmem:[%s587_s3 + $0x20] sm:$0xff] %vm19_vm0, %v289_v53  ;;  %v259_v61 = vld [vmem:[#allocation2 + $0x68] sm:$0xff]  ;;  %v292_v62 = vmax.f32 %v276_v57, 0.0  ;;  %v274_v0 = vadd.f32 %v492_v60, %v251_v59 }
  0xea   :  { %313 = vst.msk [vmem:[%s587_s3 + $0x60] sm:$0xff] %vm19_vm0, %v297_v54  ;;  %v300_v63 = vmax.f32 %v284_v58, 0.0  ;;  %v282_v1 = vadd.f32 %v492_v60, %v259_v61 }
  0xeb   :  { %308 = vst.msk [vmem:[%s587_s3 + $0x38] sm:$0xff] %vm19_vm0, %v292_v62  ;;  %v290_v2 = vmax.f32 %v274_v0, 0.0 }
  0xec   :  { %316 = vst.msk [vmem:[%s587_s3 + $0x78] sm:$0xff] %vm19_vm0, %v300_v63  ;;  %v298_v3 = vmax.f32 %v282_v1, 0.0 }
  0xed   :  { %306 = vst.msk [vmem:[%s587_s3 + $0x28] sm:$0xff] %vm19_vm0, %v290_v2 }
  0xee   :  { %314 = vst.msk [vmem:[%s587_s3 + $0x68] sm:$0xff] %vm19_vm0, %v298_v3 }

</bundles_post_ra>
